<compile_context>
chip_gen: v7x
topology: tpu7x:2x2x1
jax: 0.10.0
libtpu: 0.0.40
codegen_flags: <defaults>
</compile_context>

<pallas_src>
import numpy as np
import jax
import jax.numpy as jnp
from jax import lax
from jax.experimental import pallas as pl
from jax.experimental.pallas import tpu as pltpu


def _mrf_two_body_kernel(c1_ref, c2_ref, m1_ref, m2_ref, expand_ref, reduce_ref,
                         we1c_ref, we1m_ref, be1_ref, we2_ref, be2_ref,
                         wx1_ref, bx1_ref, wx2_ref, bx2_ref,
                         wp1_ref, bp1_ref, wp2t_ref, bp2_ref,
                         out_ref):
    BL = c1_ref.shape[0]          # B * L rows per code word

    def dense(x, w_ref, b_ref):
        return jnp.dot(x, w_ref[...], preferred_element_type=jnp.float32) + b_ref[...]

    # --- eta_nnet: both code words in a single matmul chain (2*B*L rows) ---------
    c_both = jnp.concatenate([c1_ref[...], c2_ref[...]], axis=0)        # (2BL, S)
    m_both = jnp.concatenate([m1_ref[...], m2_ref[...]], axis=0)        # (2B, 1+J)

    # first layer pre-activation, rho never built:
    #   rho @ We1 = c @ We1_c + Expand @ (meta @ We1_m)
    meta_h = jnp.dot(m_both, we1m_ref[...],
                     preferred_element_type=jnp.float32)                # (2B, H)
    pre = (jnp.dot(c_both, we1c_ref[...], preferred_element_type=jnp.float32)
           + jnp.dot(expand_ref[...], meta_h, preferred_element_type=jnp.float32)
           + be1_ref[...])                                              # (2BL, H)
    h1 = jnp.maximum(pre, 0.0)
    e_full = dense(h1, we2_ref, be2_ref)                                # (2BL, N)

    # eta = eta_nnet(rho_1) + eta_nnet(rho_2)  (tile-aligned static slice)
    eta = e_full[:BL] + e_full[BL:]                                     # (BL, N)

    # --- xi_nnet per position ----------------------------------------------------
    h2 = jnp.maximum(dense(eta, wx1_ref, bx1_ref), 0.0)                 # (BL, H)
    xi_full = dense(h2, wx2_ref, bx2_ref)                               # (BL, M)

    # --- code_length_reduction: mean over L as an MXU matmul ----------------------
    xi = jnp.dot(reduce_ref[...], xi_full,
                 preferred_element_type=jnp.float32)                    # (B, M)

    # --- psi_nnet -> exp, written lane-dense as (1, B) ----------------------------
    h3 = jnp.maximum(dense(xi, wp1_ref, bp1_ref), 0.0)                  # (B, H)
    out_1b = lax.dot_general(wp2t_ref[...], h3,
                             dimension_numbers=(((1,), (1,)), ((), ())),
                             preferred_element_type=jnp.float32)        # (1, B)
    out_ref[...] = jnp.exp(out_1b + bp2_ref[...]).astype(out_ref.dtype)


def neural_two_body_potential(params, c_1_bls, nu_1_bj, pi_1_b,
                              c_2_bls, nu_2_bj, pi_2_b):
    B, L, S = c_1_bls.shape
    (we1, be1, we2, be2, wx1, bx1, wx2, bx2, wp1, bp1, wp2, bp2) = params

    # per-batch "meta feature" rows: [log(pi), nu]  (tiny; no (B,L,F) HBM round-trip)
    def make_meta(pi, nu):
        lp = jnp.log(pi)[:, None].astype(jnp.float32)
        if nu is None:
            return lp                                  # requires we1 with S+1 rows
        return jnp.concatenate([lp, nu.astype(jnp.float32)], axis=-1)

    m1 = make_meta(pi_1_b, nu_1_bj)                    # (B, 1+J)
    m2 = make_meta(pi_2_b, nu_2_bj)
    assert we1.shape[0] == S + m1.shape[-1], "we1 rows must match S + 1 + n_meta"

    # row-major flatten of the code symbols (layout no-op in XLA)
    c1 = c_1_bls.reshape(B * L, S).astype(jnp.float32)
    c2 = c_2_bls.reshape(B * L, S).astype(jnp.float32)

    # split the first-layer weight: code-symbol rows vs (log pi, nu) rows
    we1_c = we1[:S]                                    # (S, H)
    we1_m = we1[S:]                                    # (1+J, H)
    wp2_t = wp2.T                                      # (1, H) -> lane-dense output

    # constant indicator matrices (numpy -> baked constants, used as MXU operands):
    #   expand[(p*B+b)*L + l, p*B + b] = 1         (broadcast per-batch meta over L)
    #   reduce[b, b*L + l]             = 1/L       (mean over code_length L)
    expand = jnp.asarray(np.kron(np.eye(2 * B, dtype=np.float32),
                                 np.ones((L, 1), np.float32)))          # (2BL, 2B)
    reduce_ = jnp.asarray(np.kron(np.eye(B, dtype=np.float32),
                                  np.full((1, L), 1.0 / L, np.float32)))  # (B, BL)

    args = (c1, c2, m1, m2, expand, reduce_,
            we1_c, we1_m, be1, we2, be2,
            wx1, bx1, wx2, bx2, wp1, bp1, wp2_t, bp2)

    def full_spec(a):
        return pl.BlockSpec(a.shape, lambda i: (0,) * a.ndim)

    out = pl.pallas_call(
        _mrf_two_body_kernel,
        out_shape=jax.ShapeDtypeStruct((1, B), jnp.float32),
        grid_spec=pltpu.PrefetchScalarGridSpec(
            num_scalar_prefetch=0,
            grid=(1,),  # whole problem fits one VMEM tile (~50 KB); see TODO above
            in_specs=[full_spec(a) for a in args],
            out_specs=pl.BlockSpec((1, B), lambda i: (0, 0)),
        ),
        compiler_params=pltpu.CompilerParams(
            dimension_semantics=("arbitrary",)),
    )(*args)

    return out[0]                                      # (B,)


def _reference(params, c1, nu1, pi1, c2, nu2, pi2):
    """Pure-JAX reference mirroring the torch forward (for correctness check)."""
    (we1, be1, we2, be2, wx1, bx1, wx2, bx2, wp1, bp1, wp2, bp2) = params
    B, L, S = c1.shape

    def make_rho(c, pi, nu):
        lp = jnp.log(pi)
        parts = [c, jnp.broadcast_to(lp[:, None, None], (B, L, 1)),
                 jnp.broadcast_to(nu[:, None, :], (B, L, nu.shape[-1]))]
        return jnp.concatenate(parts, axis=-1)

    def dense(x, w, b):
        return jnp.dot(x, w, precision="highest") + b

    def eta_nnet(x):
        return dense(jnp.maximum(dense(x, we1, be1), 0.0), we2, be2)

    rho1, rho2 = make_rho(c1, pi1, nu1), make_rho(c2, pi2, nu2)
    eta = eta_nnet(rho1) + eta_nnet(rho2)
    xi_full = dense(jnp.maximum(dense(eta, wx1, bx1), 0.0), wx2, bx2)
    xi = jnp.mean(xi_full, axis=1)          # code_length_reduction = mean over L
    out = jnp.exp(dense(jnp.maximum(dense(xi, wp1, bp1), 0.0), wp2, bp2))
    return out[:, 0]


def init_params(key, F, H, N, M):
    keys = jax.random.split(key, 6)
    scale = 0.1
    we1 = scale * jax.random.normal(keys[0], (F, H), jnp.float32)
    be1 = jnp.zeros((1, H), jnp.float32)
    we2 = scale * jax.random.normal(keys[1], (H, N), jnp.float32)
    be2 = jnp.zeros((1, N), jnp.float32)
    wx1 = scale * jax.random.normal(keys[2], (N, H), jnp.float32)
    bx1 = jnp.zeros((1, H), jnp.float32)
    wx2 = scale * jax.random.normal(keys[3], (H, M), jnp.float32)
    bx2 = jnp.zeros((1, M), jnp.float32)
    wp1 = scale * jax.random.normal(keys[4], (M, H), jnp.float32)
    bp1 = jnp.zeros((1, H), jnp.float32)
    wp2 = scale * jax.random.normal(keys[5], (H, 1), jnp.float32)
    bp2 = jnp.zeros((1, 1), jnp.float32)
    return (we1, be1, we2, be2, wx1, bx1, wx2, bx2, wp1, bp1, wp2, bp2)


if __name__ == "__main__":
    # Small synthetic shapes consistent with the module
    B, L, S, n_meta = 8, 16, 4, 2          # batch, code_length, n_symbols, n_meta
    H, N, M = 32, 32, 16                   # hidden widths / eta-out / xi-out
    F = S + 1 + n_meta

    key = jax.random.PRNGKey(0)
    k1, k2, k3, k4, k5, k6, kp = jax.random.split(key, 7)

    c_1_bls = jax.random.normal(k1, (B, L, S), jnp.float32)
    c_2_bls = jax.random.normal(k2, (B, L, S), jnp.float32)
    nu_1_bj = jax.random.normal(k3, (B, n_meta), jnp.float32)
    nu_2_bj = jax.random.normal(k4, (B, n_meta), jnp.float32)
    pi_1_b = jax.random.uniform(k5, (B,), jnp.float32, 0.1, 1.0)
    pi_2_b = jax.random.uniform(k6, (B,), jnp.float32, 0.1, 1.0)

    params = init_params(kp, F, H, N, M)

    out = neural_two_body_potential(params, c_1_bls, nu_1_bj, pi_1_b,
                                    c_2_bls, nu_2_bj, pi_2_b)
    out = jax.block_until_ready(out)
    assert out.shape == (B,)

    ref = jax.block_until_ready(
        _reference(params, c_1_bls, nu_1_bj, pi_1_b, c_2_bls, nu_2_bj, pi_2_b))
    # documented tolerance: MXU default precision vs precision="highest" reference
    assert jnp.allclose(out, ref, rtol=5e-3, atol=5e-3), (out, ref)

    print("KERNEL_OK")
</pallas_src>

<mosaic_0001>
module attributes {stable_mosaic.version = 11 : i64} {
  func.func @_mrf_two_body_kernel(%arg0: i32, %arg1: memref<128x4xf32, #tpu.memory_space<vmem>>, %arg2: memref<128x4xf32, #tpu.memory_space<vmem>>, %arg3: memref<8x3xf32, #tpu.memory_space<vmem>>, %arg4: memref<8x3xf32, #tpu.memory_space<vmem>>, %arg5: memref<256x16xf32, #tpu.memory_space<vmem>>, %arg6: memref<8x128xf32, #tpu.memory_space<vmem>>, %arg7: memref<4x32xf32, #tpu.memory_space<vmem>>, %arg8: memref<3x32xf32, #tpu.memory_space<vmem>>, %arg9: memref<1x32xf32, #tpu.memory_space<vmem>>, %arg10: memref<32x32xf32, #tpu.memory_space<vmem>>, %arg11: memref<1x32xf32, #tpu.memory_space<vmem>>, %arg12: memref<32x32xf32, #tpu.memory_space<vmem>>, %arg13: memref<1x32xf32, #tpu.memory_space<vmem>>, %arg14: memref<32x16xf32, #tpu.memory_space<vmem>>, %arg15: memref<1x16xf32, #tpu.memory_space<vmem>>, %arg16: memref<16x32xf32, #tpu.memory_space<vmem>>, %arg17: memref<1x32xf32, #tpu.memory_space<vmem>>, %arg18: memref<1x32xf32, #tpu.memory_space<vmem>>, %arg19: memref<1x1xf32, #tpu.memory_space<vmem>>, %arg20: memref<1x8xf32, #tpu.memory_space<vmem>>) attributes {dimension_semantics = [#tpu.dimension_semantics<arbitrary>], iteration_bounds = array<i64: 1>, scalar_prefetch = 0 : i64, scratch_operands = 0 : i64, tpu.core_type = #tpu.core_type<tc>, window_params = [{pipeline_mode = #tpu.pipeline_mode<synchronous>, transform_indices = @transform_0, window_bounds = array<i64: 128, 4>}, {pipeline_mode = #tpu.pipeline_mode<synchronous>, transform_indices = @transform_1, window_bounds = array<i64: 128, 4>}, {pipeline_mode = #tpu.pipeline_mode<synchronous>, transform_indices = @transform_2, window_bounds = array<i64: 8, 3>}, {pipeline_mode = #tpu.pipeline_mode<synchronous>, transform_indices = @transform_3, window_bounds = array<i64: 8, 3>}, {pipeline_mode = #tpu.pipeline_mode<synchronous>, transform_indices = @transform_4, window_bounds = array<i64: 256, 16>}, {pipeline_mode = #tpu.pipeline_mode<synchronous>, transform_indices = @transform_5, window_bounds = array<i64: 8, 128>}, {pipeline_mode = #tpu.pipeline_mode<synchronous>, transform_indices = @transform_6, window_bounds = array<i64: 4, 32>}, {pipeline_mode = #tpu.pipeline_mode<synchronous>, transform_indices = @transform_7, window_bounds = array<i64: 3, 32>}, {pipeline_mode = #tpu.pipeline_mode<synchronous>, transform_indices = @transform_8, window_bounds = array<i64: 1, 32>}, {pipeline_mode = #tpu.pipeline_mode<synchronous>, transform_indices = @transform_9, window_bounds = array<i64: 32, 32>}, {pipeline_mode = #tpu.pipeline_mode<synchronous>, transform_indices = @transform_10, window_bounds = array<i64: 1, 32>}, {pipeline_mode = #tpu.pipeline_mode<synchronous>, transform_indices = @transform_11, window_bounds = array<i64: 32, 32>}, {pipeline_mode = #tpu.pipeline_mode<synchronous>, transform_indices = @transform_12, window_bounds = array<i64: 1, 32>}, {pipeline_mode = #tpu.pipeline_mode<synchronous>, transform_indices = @transform_13, window_bounds = array<i64: 32, 16>}, {pipeline_mode = #tpu.pipeline_mode<synchronous>, transform_indices = @transform_14, window_bounds = array<i64: 1, 16>}, {pipeline_mode = #tpu.pipeline_mode<synchronous>, transform_indices = @transform_15, window_bounds = array<i64: 16, 32>}, {pipeline_mode = #tpu.pipeline_mode<synchronous>, transform_indices = @transform_16, window_bounds = array<i64: 1, 32>}, {pipeline_mode = #tpu.pipeline_mode<synchronous>, transform_indices = @transform_17, window_bounds = array<i64: 1, 32>}, {pipeline_mode = #tpu.pipeline_mode<synchronous>, transform_indices = @transform_18, window_bounds = array<i64: 1, 1>}, {pipeline_mode = #tpu.pipeline_mode<synchronous>, transform_indices = @transform_19, window_bounds = array<i64: 1, 8>}]} {
    %c0 = arith.constant 0 : index
    %c0_0 = arith.constant 0 : index
    %0 = vector.load %arg1[%c0, %c0_0] : memref<128x4xf32, #tpu.memory_space<vmem>>, vector<128x4xf32>
    %c0_1 = arith.constant 0 : index
    %c0_2 = arith.constant 0 : index
    %1 = vector.load %arg2[%c0_1, %c0_2] : memref<128x4xf32, #tpu.memory_space<vmem>>, vector<128x4xf32>
    %2 = tpu.concatenate %0, %1 in 0 : vector<128x4xf32>, vector<128x4xf32> -> vector<256x4xf32>
    %c0_3 = arith.constant 0 : index
    %c0_4 = arith.constant 0 : index
    %3 = vector.load %arg3[%c0_3, %c0_4] : memref<8x3xf32, #tpu.memory_space<vmem>>, vector<8x3xf32>
    %c0_5 = arith.constant 0 : index
    %c0_6 = arith.constant 0 : index
    %4 = vector.load %arg4[%c0_5, %c0_6] : memref<8x3xf32, #tpu.memory_space<vmem>>, vector<8x3xf32>
    %5 = tpu.concatenate %3, %4 in 0 : vector<8x3xf32>, vector<8x3xf32> -> vector<16x3xf32>
    %c0_7 = arith.constant 0 : index
    %c0_8 = arith.constant 0 : index
    %6 = vector.load %arg8[%c0_7, %c0_8] : memref<3x32xf32, #tpu.memory_space<vmem>>, vector<3x32xf32>
    %cst = arith.constant dense<0.000000e+00> : vector<16x32xf32>
    %7 = tpu.matmul %5, %6, %cst {dimension_numbers = #tpu.dot_dimension_numbers<[1], [0], [0], [1], [0, 0, 1, 1], [], []>} : vector<16x3xf32>, vector<3x32xf32>, vector<16x32xf32> -> vector<16x32xf32>
    %c0_9 = arith.constant 0 : index
    %c0_10 = arith.constant 0 : index
    %8 = vector.load %arg7[%c0_9, %c0_10] : memref<4x32xf32, #tpu.memory_space<vmem>>, vector<4x32xf32>
    %cst_11 = arith.constant dense<0.000000e+00> : vector<256x32xf32>
    %9 = tpu.matmul %2, %8, %cst_11 {dimension_numbers = #tpu.dot_dimension_numbers<[1], [0], [0], [1], [0, 0, 1, 1], [], []>} : vector<256x4xf32>, vector<4x32xf32>, vector<256x32xf32> -> vector<256x32xf32>
    %c0_12 = arith.constant 0 : index
    %c0_13 = arith.constant 0 : index
    %10 = vector.load %arg5[%c0_12, %c0_13] : memref<256x16xf32, #tpu.memory_space<vmem>>, vector<256x16xf32>
    %cst_14 = arith.constant dense<0.000000e+00> : vector<256x32xf32>
    %11 = tpu.matmul %10, %7, %cst_14 {dimension_numbers = #tpu.dot_dimension_numbers<[1], [0], [0], [1], [0, 0, 1, 1], [], []>} : vector<256x16xf32>, vector<16x32xf32>, vector<256x32xf32> -> vector<256x32xf32>
    %12 = arith.addf %9, %11 : vector<256x32xf32>
    %c0_15 = arith.constant 0 : index
    %c0_16 = arith.constant 0 : index
    %13 = vector.load %arg9[%c0_15, %c0_16] : memref<1x32xf32, #tpu.memory_space<vmem>>, vector<1x32xf32>
    %14 = vector.broadcast %13 : vector<1x32xf32> to vector<256x32xf32>
    %15 = arith.addf %12, %14 : vector<256x32xf32>
    %cst_17 = arith.constant 0.000000e+00 : f32
    %16 = vector.broadcast %cst_17 : f32 to vector<256x32xf32>
    %17 = arith.maximumf %15, %16 : vector<256x32xf32>
    %c0_18 = arith.constant 0 : index
    %c0_19 = arith.constant 0 : index
    %18 = vector.load %arg10[%c0_18, %c0_19] : memref<32x32xf32, #tpu.memory_space<vmem>>, vector<32x32xf32>
    %cst_20 = arith.constant dense<0.000000e+00> : vector<256x32xf32>
    %19 = tpu.matmul %17, %18, %cst_20 {dimension_numbers = #tpu.dot_dimension_numbers<[1], [0], [0], [1], [0, 0, 1, 1], [], []>} : vector<256x32xf32>, vector<32x32xf32>, vector<256x32xf32> -> vector<256x32xf32>
    %c0_21 = arith.constant 0 : index
    %c0_22 = arith.constant 0 : index
    %20 = vector.load %arg11[%c0_21, %c0_22] : memref<1x32xf32, #tpu.memory_space<vmem>>, vector<1x32xf32>
    %21 = vector.broadcast %20 : vector<1x32xf32> to vector<256x32xf32>
    %22 = arith.addf %19, %21 : vector<256x32xf32>
    %23 = vector.extract_strided_slice %22 {offsets = [0, 0], sizes = [128, 32], strides = [1, 1]} : vector<256x32xf32> to vector<128x32xf32>
    %24 = vector.extract_strided_slice %22 {offsets = [128, 0], sizes = [128, 32], strides = [1, 1]} : vector<256x32xf32> to vector<128x32xf32>
    %25 = arith.addf %23, %24 : vector<128x32xf32>
    %c0_23 = arith.constant 0 : index
    %c0_24 = arith.constant 0 : index
    %26 = vector.load %arg12[%c0_23, %c0_24] : memref<32x32xf32, #tpu.memory_space<vmem>>, vector<32x32xf32>
    %cst_25 = arith.constant dense<0.000000e+00> : vector<128x32xf32>
    %27 = tpu.matmul %25, %26, %cst_25 {dimension_numbers = #tpu.dot_dimension_numbers<[1], [0], [0], [1], [0, 0, 1, 1], [], []>} : vector<128x32xf32>, vector<32x32xf32>, vector<128x32xf32> -> vector<128x32xf32>
    %c0_26 = arith.constant 0 : index
    %c0_27 = arith.constant 0 : index
    %28 = vector.load %arg13[%c0_26, %c0_27] : memref<1x32xf32, #tpu.memory_space<vmem>>, vector<1x32xf32>
    %29 = vector.broadcast %28 : vector<1x32xf32> to vector<128x32xf32>
    %30 = arith.addf %27, %29 : vector<128x32xf32>
    %cst_28 = arith.constant 0.000000e+00 : f32
    %31 = vector.broadcast %cst_28 : f32 to vector<128x32xf32>
    %32 = arith.maximumf %30, %31 : vector<128x32xf32>
    %c0_29 = arith.constant 0 : index
    %c0_30 = arith.constant 0 : index
    %33 = vector.load %arg14[%c0_29, %c0_30] : memref<32x16xf32, #tpu.memory_space<vmem>>, vector<32x16xf32>
    %cst_31 = arith.constant dense<0.000000e+00> : vector<128x16xf32>
    %34 = tpu.matmul %32, %33, %cst_31 {dimension_numbers = #tpu.dot_dimension_numbers<[1], [0], [0], [1], [0, 0, 1, 1], [], []>} : vector<128x32xf32>, vector<32x16xf32>, vector<128x16xf32> -> vector<128x16xf32>
    %c0_32 = arith.constant 0 : index
    %c0_33 = arith.constant 0 : index
    %35 = vector.load %arg15[%c0_32, %c0_33] : memref<1x16xf32, #tpu.memory_space<vmem>>, vector<1x16xf32>
    %36 = vector.broadcast %35 : vector<1x16xf32> to vector<128x16xf32>
    %37 = arith.addf %34, %36 : vector<128x16xf32>
    %c0_34 = arith.constant 0 : index
    %c0_35 = arith.constant 0 : index
    %38 = vector.load %arg6[%c0_34, %c0_35] : memref<8x128xf32, #tpu.memory_space<vmem>>, vector<8x128xf32>
    %cst_36 = arith.constant dense<0.000000e+00> : vector<8x16xf32>
    %39 = tpu.matmul %38, %37, %cst_36 {dimension_numbers = #tpu.dot_dimension_numbers<[1], [0], [0], [1], [0, 0, 1, 1], [], []>} : vector<8x128xf32>, vector<128x16xf32>, vector<8x16xf32> -> vector<8x16xf32>
    %c0_37 = arith.constant 0 : index
    %c0_38 = arith.constant 0 : index
    %40 = vector.load %arg16[%c0_37, %c0_38] : memref<16x32xf32, #tpu.memory_space<vmem>>, vector<16x32xf32>
    %cst_39 = arith.constant dense<0.000000e+00> : vector<8x32xf32>
    %41 = tpu.matmul %39, %40, %cst_39 {dimension_numbers = #tpu.dot_dimension_numbers<[1], [0], [0], [1], [0, 0, 1, 1], [], []>} : vector<8x16xf32>, vector<16x32xf32>, vector<8x32xf32> -> vector<8x32xf32>
    %c0_40 = arith.constant 0 : index
    %c0_41 = arith.constant 0 : index
    %42 = vector.load %arg17[%c0_40, %c0_41] : memref<1x32xf32, #tpu.memory_space<vmem>>, vector<1x32xf32>
    %43 = vector.broadcast %42 : vector<1x32xf32> to vector<8x32xf32>
    %44 = arith.addf %41, %43 : vector<8x32xf32>
    %cst_42 = arith.constant 0.000000e+00 : f32
    %45 = vector.broadcast %cst_42 : f32 to vector<8x32xf32>
    %46 = arith.maximumf %44, %45 : vector<8x32xf32>
    %c0_43 = arith.constant 0 : index
    %c0_44 = arith.constant 0 : index
    %47 = vector.load %arg18[%c0_43, %c0_44] : memref<1x32xf32, #tpu.memory_space<vmem>>, vector<1x32xf32>
    %cst_45 = arith.constant dense<0.000000e+00> : vector<1x8xf32>
    %48 = tpu.matmul %47, %46, %cst_45 {dimension_numbers = #tpu.dot_dimension_numbers<[1], [1], [0], [0], [0, 0, 1, 0], [], []>} : vector<1x32xf32>, vector<8x32xf32>, vector<1x8xf32> -> vector<1x8xf32>
    %c0_46 = arith.constant 0 : index
    %c0_47 = arith.constant 0 : index
    %49 = vector.load %arg19[%c0_46, %c0_47] : memref<1x1xf32, #tpu.memory_space<vmem>>, vector<1x1xf32>
    %50 = vector.broadcast %49 : vector<1x1xf32> to vector<1x8xf32>
    %51 = arith.addf %48, %50 : vector<1x8xf32>
    %52 = math.exp %51 : vector<1x8xf32>
    %c0_48 = arith.constant 0 : index
    %c0_49 = arith.constant 0 : index
    %53 = vector.load %arg20[%c0_48, %c0_49] : memref<1x8xf32, #tpu.memory_space<vmem>>, vector<1x8xf32>
    tpu.vector_store %arg20[%c0_48, %c0_49], %52 {strides = array<i32>} : memref<1x8xf32, #tpu.memory_space<vmem>>, vector<1x8xf32>,
    return
  }
  func.func @transform_0(%arg0: i32) -> (i32, i32) {
    %c0_i32 = arith.constant 0 : i32
    %c0_i32_0 = arith.constant 0 : i32
    %c0_i32_1 = arith.constant 0 : i32
    return %c0_i32, %c0_i32_0 : i32, i32
  }
  func.func @transform_1(%arg0: i32) -> (i32, i32) {
    %c0_i32 = arith.constant 0 : i32
    %c0_i32_0 = arith.constant 0 : i32
    %c0_i32_1 = arith.constant 0 : i32
    return %c0_i32, %c0_i32_0 : i32, i32
  }
  func.func @transform_2(%arg0: i32) -> (i32, i32) {
    %c0_i32 = arith.constant 0 : i32
    %c0_i32_0 = arith.constant 0 : i32
    %c0_i32_1 = arith.constant 0 : i32
    return %c0_i32, %c0_i32_0 : i32, i32
  }
  func.func @transform_3(%arg0: i32) -> (i32, i32) {
    %c0_i32 = arith.constant 0 : i32
    %c0_i32_0 = arith.constant 0 : i32
    %c0_i32_1 = arith.constant 0 : i32
    return %c0_i32, %c0_i32_0 : i32, i32
  }
  func.func @transform_4(%arg0: i32) -> (i32, i32) {
    %c0_i32 = arith.constant 0 : i32
    %c0_i32_0 = arith.constant 0 : i32
    %c0_i32_1 = arith.constant 0 : i32
    return %c0_i32, %c0_i32_0 : i32, i32
  }
  func.func @transform_5(%arg0: i32) -> (i32, i32) {
    %c0_i32 = arith.constant 0 : i32
    %c0_i32_0 = arith.constant 0 : i32
    %c0_i32_1 = arith.constant 0 : i32
    return %c0_i32, %c0_i32_0 : i32, i32
  }
  func.func @transform_6(%arg0: i32) -> (i32, i32) {
    %c0_i32 = arith.constant 0 : i32
    %c0_i32_0 = arith.constant 0 : i32
    %c0_i32_1 = arith.constant 0 : i32
    return %c0_i32, %c0_i32_0 : i32, i32
  }
  func.func @transform_7(%arg0: i32) -> (i32, i32) {
    %c0_i32 = arith.constant 0 : i32
    %c0_i32_0 = arith.constant 0 : i32
    %c0_i32_1 = arith.constant 0 : i32
    return %c0_i32, %c0_i32_0 : i32, i32
  }
  func.func @transform_8(%arg0: i32) -> (i32, i32) {
    %c0_i32 = arith.constant 0 : i32
    %c0_i32_0 = arith.constant 0 : i32
    %c0_i32_1 = arith.constant 0 : i32
    return %c0_i32, %c0_i32_0 : i32, i32
  }
  func.func @transform_9(%arg0: i32) -> (i32, i32) {
    %c0_i32 = arith.constant 0 : i32
    %c0_i32_0 = arith.constant 0 : i32
    %c0_i32_1 = arith.constant 0 : i32
    return %c0_i32, %c0_i32_0 : i32, i32
  }
  func.func @transform_10(%arg0: i32) -> (i32, i32) {
    %c0_i32 = arith.constant 0 : i32
    %c0_i32_0 = arith.constant 0 : i32
    %c0_i32_1 = arith.constant 0 : i32
    return %c0_i32, %c0_i32_0 : i32, i32
  }
  func.func @transform_11(%arg0: i32) -> (i32, i32) {
    %c0_i32 = arith.constant 0 : i32
    %c0_i32_0 = arith.constant 0 : i32
    %c0_i32_1 = arith.constant 0 : i32
    return %c0_i32, %c0_i32_0 : i32, i32
  }
  func.func @transform_12(%arg0: i32) -> (i32, i32) {
    %c0_i32 = arith.constant 0 : i32
    %c0_i32_0 = arith.constant 0 : i32
    %c0_i32_1 = arith.constant 0 : i32
    return %c0_i32, %c0_i32_0 : i32, i32
  }
  func.func @transform_13(%arg0: i32) -> (i32, i32) {
    %c0_i32 = arith.constant 0 : i32
    %c0_i32_0 = arith.constant 0 : i32
    %c0_i32_1 = arith.constant 0 : i32
    return %c0_i32, %c0_i32_0 : i32, i32
  }
  func.func @transform_14(%arg0: i32) -> (i32, i32) {
    %c0_i32 = arith.constant 0 : i32
    %c0_i32_0 = arith.constant 0 : i32
    %c0_i32_1 = arith.constant 0 : i32
    return %c0_i32, %c0_i32_0 : i32, i32
  }
  func.func @transform_15(%arg0: i32) -> (i32, i32) {
    %c0_i32 = arith.constant 0 : i32
    %c0_i32_0 = arith.constant 0 : i32
    %c0_i32_1 = arith.constant 0 : i32
    return %c0_i32, %c0_i32_0 : i32, i32
  }
  func.func @transform_16(%arg0: i32) -> (i32, i32) {
    %c0_i32 = arith.constant 0 : i32
    %c0_i32_0 = arith.constant 0 : i32
    %c0_i32_1 = arith.constant 0 : i32
    return %c0_i32, %c0_i32_0 : i32, i32
  }
  func.func @transform_17(%arg0: i32) -> (i32, i32) {
    %c0_i32 = arith.constant 0 : i32
    %c0_i32_0 = arith.constant 0 : i32
    %c0_i32_1 = arith.constant 0 : i32
    return %c0_i32, %c0_i32_0 : i32, i32
  }
  func.func @transform_18(%arg0: i32) -> (i32, i32) {
    %c0_i32 = arith.constant 0 : i32
    %c0_i32_0 = arith.constant 0 : i32
    %c0_i32_1 = arith.constant 0 : i32
    return %c0_i32, %c0_i32_0 : i32, i32
  }
  func.func @transform_19(%arg0: i32) -> (i32, i32) {
    %c0_i32 = arith.constant 0 : i32
    %c0_i32_0 = arith.constant 0 : i32
    %c0_i32_1 = arith.constant 0 : i32
    return %c0_i32, %c0_i32_0 : i32, i32
  }
}

</mosaic_0001>

<bundles_post_ra>
// kernel: tpu_custom_call.1
= control target key start
LH: loop header
LB: loop body
LE: loop exit
PB: predicated region body
PF: predicated region fallthrough
CT: control target
= control target key end

     0   :  { %s3287_s0 = inlined_call_operand.vmem [shape: f32[128,4], index: 0, kind: input, shape index: {}]   ;;  %s3288_s1 = inlined_call_operand.vmem [shape: f32[128,4], index: 1, kind: input, shape index: {}]   ;;  %s3289_s2 = inlined_call_operand.vmem [shape: f32[8,3], index: 2, kind: input, shape index: {}]   ;;  %s3290_s3 = inlined_call_operand.vmem [shape: f32[8,3], index: 3, kind: input, shape index: {}]   ;;  %s3291_s4 = inlined_call_operand.vmem [shape: f32[256,16], index: 4, kind: input, shape index: {}]   ;;  %s3292_s5 = inlined_call_operand.vmem [shape: f32[8,128], index: 5, kind: input, shape index: {}]   ;;  %s3293_s6 = inlined_call_operand.vmem [shape: f32[4,32], index: 6, kind: input, shape index: {}]   ;;  %s3294_s7 = inlined_call_operand.vmem [shape: f32[3,32], index: 7, kind: input, shape index: {}]   ;;  %s3295_s8 = inlined_call_operand.vmem [shape: f32[1,32], index: 8, kind: input, shape index: {}]   ;;  %s3296_s9 = inlined_call_operand.vmem [shape: f32[32,32], index: 9, kind: input, shape index: {}]   ;;  %s3297_s10 = inlined_call_operand.vmem [shape: f32[1,32], index: 10, kind: input, shape index: {}]   ;;  %s3298_s11 = inlined_call_operand.vmem [shape: f32[32,32], index: 11, kind: input, shape index: {}]   ;;  %s3299_s12 = inlined_call_operand.vmem [shape: f32[1,32], index: 12, kind: input, shape index: {}]   ;;  %s3300_s13 = inlined_call_operand.vmem [shape: f32[32,16], index: 13, kind: input, shape index: {}]   ;;  %s3301_s14 = inlined_call_operand.vmem [shape: f32[1,16], index: 14, kind: input, shape index: {}]   ;;  %s3302_s15 = inlined_call_operand.vmem [shape: f32[16,32], index: 15, kind: input, shape index: {}]   ;;  %s3303_s16 = inlined_call_operand.vmem [shape: f32[1,32], index: 16, kind: input, shape index: {}]   ;;  %s3304_s17 = inlined_call_operand.vmem [shape: f32[1,32], index: 17, kind: input, shape index: {}]   ;;  %s3305_s18 = inlined_call_operand.<no memory space> [shape: f32[1,1], index: 18, kind: input, shape index: {}]   ;;  %s3306_s19 = inlined_call_operand.hbm [shape: f32[1,8], index: 19, kind: output, shape index: {}]  }
   0x1   :  { %3309 = sst [smem:[#allocation6_spill]] %s3287_s0  ;;  %v24_v0 = vstv %s3305_s18 }
   0x2   :  { %3310 = sst [smem:[#allocation7_spill]] %s3288_s1  ;;  %25 = vst [vmem:[#allocation2] sm:$0x1] %v24_v0 }
   0x3   :  { %3311 = sst [smem:[#allocation8_spill]] %s3289_s2 }
   0x4   :  { %3312 = sst [smem:[#allocation9_spill]] %s3290_s3 }
   0x5   :  { %v99_v1 = vld [vmem:[%s3294_s7] sm:$0x7]  ;;  %vm107_vm0 = vcmask 1042432   ;;  %s3313_s2 = sld [smem:[#allocation8_spill]]  ;;  %vm100_vm1 = vcmask 23552   ;;  %s3314_s25 = sld [smem:[#allocation9_spill]] }
   0x6   :  { %2278 = vmatprep.subr.msk.mxu0 %vm107_vm0, %v99_v1 }
   0xb   :  { %v97_v2 = vld [vmem:[%s3313_s2] sm:$0xff] }
   0xc   :  { %v98_v3 = vld [vmem:[%s3314_s25] sm:$0xff]  ;;  %2280 = vmatprep.mubr.msk.f32.mxu0 %vm100_vm1, %v97_v2 }
   0xd   :  { %26 = vsyncpa [#allocation4], 0  ;;  %2279 = vmatpush3.msk.msra.mxu0 %vm107_vm0, %v99_v1  ;;  %v187_v4 = vld [vmem:[%s3291_s4] sm:$0xff]  ;;  %vm219_vm2 = vcmask 130048   ;;  %vm638_vm3 = vcmask 1043456   ;;  %v939_v10 = vld [vmem:[%s3296_s9 + $0x8] sm:$0xff] }
   0xe   :  { %2281 = vmatmul.mubr.msk.f32.vlgmr.msra.gmra.mrb[0].mxu0 %vm100_vm1, %v98_v3  ;;  %2287 = vmatprep.mubr.msk.f32.mxu1 %vm219_vm2, %v187_v4  ;;  %v186_v8 = vld [vmem:[%s3293_s6] sm:$0xf]  ;;  %v188_v11 = vld [vmem:[%s3291_s4 + $0x8] sm:$0xff]  ;;  %v189_v13 = vld [vmem:[%s3291_s4 + $0x10] sm:$0xff]  ;;  %s3315_s18 = sld [smem:[#allocation6_spill]]  ;;  %vm541_vm4 = vcmask 31744  }
   0xf   :  { %v938_v9 = vld [vmem:[%s3296_s9] sm:$0xff]  ;;  %v190_v14 = vld [vmem:[%s3291_s4 + $0x18] sm:$0xff]  ;;  %v192_v16 = vld [vmem:[%s3291_s4 + $0x28] sm:$0xff]  ;;  %s3316_s2 = sld [smem:[#allocation7_spill]]  ;;  %vm949_vm5 = vcmask 261120   ;;  %vm2720_vm6 = vmmov 0  }
  0x10   :  { %v2556_v12 = vpack.c.bf16 %v939_v10, %v938_v9  ;;  %v191_v15 = vld [vmem:[%s3291_s4 + $0x20] sm:$0xff]  ;;  %v193_v17 = vld [vmem:[%s3291_s4 + $0x30] sm:$0xff]  ;;  %v194_v18 = vld [vmem:[%s3291_s4 + $0x38] sm:$0xff]  ;;  %vm1954_vm7 = vcmask 57344  }
  0x11   :  { %v195_v19 = vld [vmem:[%s3291_s4 + $0x40] sm:$0xff]  ;;  %v196_v20 = vld [vmem:[%s3291_s4 + $0x48] sm:$0xff]  ;;  %v197_v21 = vld [vmem:[%s3291_s4 + $0x50] sm:$0xff] }
  0x12   :  { %2557 = vmatprep.subr.bf16.mxu0 %v2556_v12  ;;  %v198_v22 = vld [vmem:[%s3291_s4 + $0x58] sm:$0xff]  ;;  %v199_v23 = vld [vmem:[%s3291_s4 + $0x60] sm:$0xff]  ;;  %v200_v24 = vld [vmem:[%s3291_s4 + $0x68] sm:$0xff] }
  0x13   :  { %2559 = vmatpush3.bf16.msra.mxu0 %v2556_v12  ;;  %v201_v25 = vld [vmem:[%s3291_s4 + $0x70] sm:$0xff]  ;;  %v202_v26 = vld [vmem:[%s3291_s4 + $0x78] sm:$0xff]  ;;  %v203_v27 = vld [vmem:[%s3291_s4 + $0x80] sm:$0xff] }
  0x14   :  { %v204_v28 = vld [vmem:[%s3291_s4 + $0x88] sm:$0xff]  ;;  %v205_v29 = vld [vmem:[%s3291_s4 + $0x90] sm:$0xff]  ;;  %v206_v30 = vld [vmem:[%s3291_s4 + $0x98] sm:$0xff] }
  0x15   :  { %v207_v31 = vld [vmem:[%s3291_s4 + $0xa0] sm:$0xff]  ;;  %v208_v32 = vld [vmem:[%s3291_s4 + $0xa8] sm:$0xff]  ;;  %v209_v33 = vld [vmem:[%s3291_s4 + $0xb0] sm:$0xff] }
  0x16   :  { %v210_v34 = vld [vmem:[%s3291_s4 + $0xb8] sm:$0xff]  ;;  %v211_v35 = vld [vmem:[%s3291_s4 + $0xc0] sm:$0xff]  ;;  %v212_v36 = vld [vmem:[%s3291_s4 + $0xc8] sm:$0xff] }
  0x17   :  { %v213_v37 = vld [vmem:[%s3291_s4 + $0xd0] sm:$0xff]  ;;  %v214_v38 = vld [vmem:[%s3291_s4 + $0xd8] sm:$0xff]  ;;  %v215_v39 = vld [vmem:[%s3291_s4 + $0xe0] sm:$0xff] }
  0x18   :  { %v216_v40 = vld [vmem:[%s3291_s4 + $0xe8] sm:$0xff]  ;;  %v217_v41 = vld [vmem:[%s3291_s4 + $0xf0] sm:$0xff]  ;;  %v218_v42 = vld [vmem:[%s3291_s4 + $0xf8] sm:$0xff] }
  0x19   :  { %v65_v43 = vld [vmem:[%s3315_s18] sm:$0xff]  ;;  %v66_v44 = vld [vmem:[%s3315_s18 + $0x8] sm:$0xff]  ;;  %v67_v45 = vld [vmem:[%s3315_s18 + $0x10] sm:$0xff] }
  0x1a   :  { %v68_v46 = vld [vmem:[%s3315_s18 + $0x18] sm:$0xff]  ;;  %v69_v47 = vld [vmem:[%s3315_s18 + $0x20] sm:$0xff]  ;;  %v70_v48 = vld [vmem:[%s3315_s18 + $0x28] sm:$0xff] }
  0x1b   :  { %v71_v49 = vld [vmem:[%s3315_s18 + $0x30] sm:$0xff]  ;;  %v72_v50 = vld [vmem:[%s3315_s18 + $0x38] sm:$0xff]  ;;  %v73_v51 = vld [vmem:[%s3315_s18 + $0x40] sm:$0xff] }
  0x1c   :  { %v74_v52 = vld [vmem:[%s3315_s18 + $0x48] sm:$0xff]  ;;  %v75_v53 = vld [vmem:[%s3315_s18 + $0x50] sm:$0xff]  ;;  %v76_v54 = vld [vmem:[%s3315_s18 + $0x58] sm:$0xff] }
  0x1d   :  { %v77_v55 = vld [vmem:[%s3315_s18 + $0x60] sm:$0xff]  ;;  %v78_v56 = vld [vmem:[%s3315_s18 + $0x68] sm:$0xff]  ;;  %v79_v57 = vld [vmem:[%s3315_s18 + $0x70] sm:$0xff] }
  0x1e   :  { %v80_v58 = vld [vmem:[%s3315_s18 + $0x78] sm:$0xff]  ;;  %v81_v59 = vld [vmem:[%s3316_s2] sm:$0xff]  ;;  %v82_v60 = vld [vmem:[%s3316_s2 + $0x8] sm:$0xff] }
  0x1f   :  { %v83_v61 = vld [vmem:[%s3316_s2 + $0x10] sm:$0xff]  ;;  %v84_v62 = vld [vmem:[%s3316_s2 + $0x18] sm:$0xff]  ;;  %v85_v63 = vld [vmem:[%s3316_s2 + $0x20] sm:$0xff] }
  0x20   :  { %v86_v0 = vld [vmem:[%s3316_s2 + $0x28] sm:$0xff]  ;;  %v87_v1 = vld [vmem:[%s3316_s2 + $0x30] sm:$0xff]  ;;  %v88_v2 = vld [vmem:[%s3316_s2 + $0x38] sm:$0xff] }
  0x21   :  { %v89_v3 = vld [vmem:[%s3316_s2 + $0x40] sm:$0xff]  ;;  %v90_v4 = vld [vmem:[%s3316_s2 + $0x48] sm:$0xff]  ;;  %v95_v9 = vld [vmem:[%s3316_s2 + $0x70] sm:$0xff] }
  0x22   :  { %v96_v10 = vld [vmem:[%s3316_s2 + $0x78] sm:$0xff] }
  0x23   :  { %v941_v12 = vld [vmem:[%s3296_s9 + $0x18] sm:$0xff] }
  0xe1   :  { %v2282_v5 = vpop.f32.mrb[0].mxu0 }
  0xe2   :  { %v177_v6 = vpop.f32.mrb[1].mxu0 }
  0xe3   :  { %v2552_v7 = vpack.c.bf16 %v2282_v5, %v177_v6  ;;  %v91_v5 = vld [vmem:[%s3316_s2 + $0x50] sm:$0xff]  ;;  %v92_v6 = vld [vmem:[%s3316_s2 + $0x58] sm:$0xff] }
  0xe5   :  { %2553 = vmatprep.subr.bf16.mxu1 %v2552_v7 }
  0xe6   :  { %2555 = vmatpush3.bf16.msra.mxu1 %v2552_v7  ;;  %v93_v7 = vld [vmem:[%s3316_s2 + $0x60] sm:$0xff] }
  0xe7   :  { %2335 = vmatprep.subr.msk.mxu1 %vm638_vm3, %v186_v8 }
  0xe9   :  { %2288 = vmatmul.mubr.msk.f32.vlgmr.msra.gmra.mrb[0].mxu1 %vm219_vm2, %v188_v11  ;;  %v940_v11 = vld [vmem:[%s3296_s9 + $0x10] sm:$0xff] }
  0xea   :  { %2290 = vmatprep.mubr.msk.f32.mxu1 %vm219_vm2, %v189_v13  ;;  %2336 = vmatpush3.msk.msra.mxu1 %vm638_vm3, %v186_v8  ;;  %v94_v8 = vld [vmem:[%s3316_s2 + $0x68] sm:$0xff]  ;;  %v2560_v13 = vpack.c.bf16 %v941_v12, %v940_v11 }
  0xec   :  { %2561 = vmatprep.subr.bf16.mxu0 %v2560_v13 }
  0xed   :  { %2291 = vmatmul.mubr.msk.f32.gmra.mrb[2].mxu1 %vm219_vm2, %v190_v14  ;;  %2563 = vmatpush3.bf16.msra.mxu0 %v2560_v13  ;;  %v1287_v14 = vld [vmem:[%s3298_s11] sm:$0xff] }
  0xee   :  { %2293 = vmatprep.mubr.msk.f32.mxu1 %vm219_vm2, %v191_v15  ;;  %v1288_v15 = vld [vmem:[%s3298_s11 + $0x8] sm:$0xff] }
  0xf1   :  { %2294 = vmatmul.mubr.msk.f32.gmra.mrb[4].mxu1 %vm219_vm2, %v192_v16  ;;  %v2564_v16 = vpack.c.bf16 %v1288_v15, %v1287_v14 }
  0xf2   :  { %2296 = vmatprep.mubr.msk.f32.mxu1 %vm219_vm2, %v193_v17  ;;  %v3116_v17 = vld [vmem:[%s3295_s8] ss:$0 sm:$0xff] }
  0xf3   :  { %2565 = vmatprep.subr.bf16.mxu0 %v2564_v16 }
  0xf5   :  { %2297 = vmatmul.mubr.msk.f32.gmra.mrb[6].mxu1 %vm219_vm2, %v194_v18 }
  0xf6   :  { %2299 = vmatprep.mubr.msk.f32.mxu1 %vm219_vm2, %v195_v19 }
  0xf9   :  { %2300 = vmatmul.mubr.msk.f32.gmra.mrb[8].mxu1 %vm219_vm2, %v196_v20 }
  0xfa   :  { %2302 = vmatprep.mubr.msk.f32.mxu1 %vm219_vm2, %v197_v21 }
  0xfd   :  { %2303 = vmatmul.mubr.msk.f32.gmra.mrb[10].mxu1 %vm219_vm2, %v198_v22 }
  0xfe   :  { %2305 = vmatprep.mubr.msk.f32.mxu1 %vm219_vm2, %v199_v23 }
 0x101   :  { %2306 = vmatmul.mubr.msk.f32.gmra.mrb[12].mxu1 %vm219_vm2, %v200_v24 }
 0x102   :  { %2308 = vmatprep.mubr.msk.f32.mxu1 %vm219_vm2, %v201_v25 }
 0x105   :  { %2309 = vmatmul.mubr.msk.f32.gmra.mrb[14].mxu1 %vm219_vm2, %v202_v26 }
 0x106   :  { %2311 = vmatprep.mubr.msk.f32.mxu1 %vm219_vm2, %v203_v27 }
 0x109   :  { %2312 = vmatmul.mubr.msk.f32.gmra.mrb[16].mxu1 %vm219_vm2, %v204_v28 }
 0x10a   :  { %2314 = vmatprep.mubr.msk.f32.mxu1 %vm219_vm2, %v205_v29 }
 0x10d   :  { %2315 = vmatmul.mubr.msk.f32.gmra.mrb[18].mxu1 %vm219_vm2, %v206_v30 }
 0x10e   :  { %2317 = vmatprep.mubr.msk.f32.mxu1 %vm219_vm2, %v207_v31 }
 0x111   :  { %2318 = vmatmul.mubr.msk.f32.gmra.mrb[20].mxu1 %vm219_vm2, %v208_v32 }
 0x112   :  { %2320 = vmatprep.mubr.msk.f32.mxu1 %vm219_vm2, %v209_v33 }
 0x115   :  { %2321 = vmatmul.mubr.msk.f32.gmra.mrb[22].mxu1 %vm219_vm2, %v210_v34 }
 0x116   :  { %2323 = vmatprep.mubr.msk.f32.mxu1 %vm219_vm2, %v211_v35 }
 0x119   :  { %2324 = vmatmul.mubr.msk.f32.gmra.mrb[24].mxu1 %vm219_vm2, %v212_v36 }
 0x11a   :  { %2326 = vmatprep.mubr.msk.f32.mxu1 %vm219_vm2, %v213_v37 }
 0x11d   :  { %2327 = vmatmul.mubr.msk.f32.gmra.mrb[26].mxu1 %vm219_vm2, %v214_v38 }
 0x11e   :  { %2329 = vmatprep.mubr.msk.f32.mxu1 %vm219_vm2, %v215_v39 }
 0x121   :  { %2330 = vmatmul.mubr.msk.f32.gmra.mrb[28].mxu1 %vm219_vm2, %v216_v40 }
 0x122   :  { %2332 = vmatprep.mubr.msk.f32.mxu1 %vm219_vm2, %v217_v41 }
 0x125   :  { %2333 = vmatmul.mubr.msk.f32.gmra.mrb[30].mxu1 %vm219_vm2, %v218_v42 }
 0x126   :  { %2337 = vmatprep.mubr.msk.f32.mxu1 %vm541_vm4, %v65_v43 }
 0x129   :  { %2338 = vmatmul.mubr.msk.f32.vlgmr.msra.gmra.mrb[0].mxu1 %vm541_vm4, %v66_v44 }
 0x12a   :  { %2340 = vmatprep.mubr.msk.f32.mxu1 %vm541_vm4, %v67_v45 }
 0x12d   :  { %2341 = vmatmul.mubr.msk.f32.gmra.mrb[2].mxu1 %vm541_vm4, %v68_v46 }
 0x12e   :  { %2343 = vmatprep.mubr.msk.f32.mxu1 %vm541_vm4, %v69_v47 }
 0x131   :  { %2344 = vmatmul.mubr.msk.f32.gmra.mrb[4].mxu1 %vm541_vm4, %v70_v48 }
 0x132   :  { %2346 = vmatprep.mubr.msk.f32.mxu1 %vm541_vm4, %v71_v49 }
 0x135   :  { %2347 = vmatmul.mubr.msk.f32.gmra.mrb[6].mxu1 %vm541_vm4, %v72_v50 }
 0x136   :  { %2349 = vmatprep.mubr.msk.f32.mxu1 %vm541_vm4, %v73_v51 }
 0x139   :  { %2350 = vmatmul.mubr.msk.f32.gmra.mrb[8].mxu1 %vm541_vm4, %v74_v52 }
 0x13a   :  { %2352 = vmatprep.mubr.msk.f32.mxu1 %vm541_vm4, %v75_v53 }
 0x13d   :  { %2353 = vmatmul.mubr.msk.f32.gmra.mrb[10].mxu1 %vm541_vm4, %v76_v54 }
 0x13e   :  { %2355 = vmatprep.mubr.msk.f32.mxu1 %vm541_vm4, %v77_v55 }
 0x141   :  { %2356 = vmatmul.mubr.msk.f32.gmra.mrb[12].mxu1 %vm541_vm4, %v78_v56 }
 0x142   :  { %2358 = vmatprep.mubr.msk.f32.mxu1 %vm541_vm4, %v79_v57 }
 0x145   :  { %2359 = vmatmul.mubr.msk.f32.gmra.mrb[14].mxu1 %vm541_vm4, %v80_v58 }
 0x146   :  { %2361 = vmatprep.mubr.msk.f32.mxu1 %vm541_vm4, %v81_v59 }
 0x149   :  { %2362 = vmatmul.mubr.msk.f32.gmra.mrb[16].mxu1 %vm541_vm4, %v82_v60 }
 0x14a   :  { %2364 = vmatprep.mubr.msk.f32.mxu1 %vm541_vm4, %v83_v61 }
 0x14d   :  { %2365 = vmatmul.mubr.msk.f32.gmra.mrb[18].mxu1 %vm541_vm4, %v84_v62 }
 0x14e   :  { %2367 = vmatprep.mubr.msk.f32.mxu1 %vm541_vm4, %v85_v63 }
 0x151   :  { %2368 = vmatmul.mubr.msk.f32.gmra.mrb[20].mxu1 %vm541_vm4, %v86_v0 }
 0x152   :  { %2370 = vmatprep.mubr.msk.f32.mxu1 %vm541_vm4, %v87_v1 }
 0x155   :  { %2371 = vmatmul.mubr.msk.f32.gmra.mrb[22].mxu1 %vm541_vm4, %v88_v2 }
 0x156   :  { %2373 = vmatprep.mubr.msk.f32.mxu1 %vm541_vm4, %v89_v3 }
 0x159   :  { %2374 = vmatmul.mubr.msk.f32.gmra.mrb[24].mxu1 %vm541_vm4, %v90_v4 }
 0x15a   :  { %2376 = vmatprep.mubr.msk.f32.mxu1 %vm541_vm4, %v91_v5 }
 0x15d   :  { %2377 = vmatmul.mubr.msk.f32.gmra.mrb[26].mxu1 %vm541_vm4, %v92_v6 }
 0x15e   :  { %2379 = vmatprep.mubr.msk.f32.mxu1 %vm541_vm4, %v93_v7 }
 0x161   :  { %2380 = vmatmul.mubr.msk.f32.gmra.mrb[28].mxu1 %vm541_vm4, %v94_v8 }
 0x162   :  { %2382 = vmatprep.mubr.msk.f32.mxu1 %vm541_vm4, %v95_v9 }
 0x165   :  { %2383 = vmatmul.mubr.msk.f32.gmra.mrb[30].mxu1 %vm541_vm4, %v96_v10 }
 0x1fc   :  { %v2339_v18 = vpop.f32.mrb[0].mxu1 }
 0x1fd   :  { %v875_v19 = vadd.f32 %v2339_v18, %v3116_v17  ;;  %v708_v20 = vpop.f32.mrb[1].mxu1 }
 0x1fe   :  { %v874_v21 = vadd.f32 %v3116_v17, %v708_v20 }
 0x1ff   :  { %v907_v24 = vmax.f32 %v875_v19, 0.0 }
 0x200   :  { %v906_v22 = vmax.f32 %v874_v21, 0.0  ;;  %v2342_v23 = vpop.f32.mrb[2].mxu1 }
 0x201   :  { %v877_v25 = vadd.f32 %v2342_v23, %v3116_v17  ;;  %v718_v26 = vpop.f32.mrb[3].mxu1 }
 0x202   :  { %v876_v27 = vadd.f32 %v3116_v17, %v718_v26  ;;  %2393 = vmatprep.mubr.msk.f32.mxu0 %vm949_vm5, %v906_v22 }
 0x203   :  { %2394 = vmatmul.mubr.msk.f32.vlgmr.msra.gmra.mrb[2].mxu0 %vm949_vm5, %v907_v24  ;;  %v909_v30 = vmax.f32 %v877_v25, 0.0 }
 0x204   :  { %v908_v28 = vmax.f32 %v876_v27, 0.0  ;;  %v2345_v29 = vpop.f32.mrb[4].mxu1  ;;  %2567 = vmatpush3.bf16.msra.mxu0 %v2564_v16 }
 0x205   :  { %v879_v31 = vadd.f32 %v2345_v29, %v3116_v17  ;;  %v728_v32 = vpop.f32.mrb[5].mxu1 }
 0x206   :  { %v878_v33 = vadd.f32 %v3116_v17, %v728_v32  ;;  %2396 = vmatprep.mubr.msk.f32.mxu0 %vm949_vm5, %v908_v28 }
 0x207   :  { %2397 = vmatmul.mubr.msk.f32.gmra.mrb[4].mxu0 %vm949_vm5, %v909_v30  ;;  %v911_v36 = vmax.f32 %v879_v31, 0.0 }
 0x208   :  { %v910_v34 = vmax.f32 %v878_v33, 0.0  ;;  %v2348_v35 = vpop.f32.mrb[6].mxu1 }
 0x209   :  { %v881_v37 = vadd.f32 %v2348_v35, %v3116_v17  ;;  %v738_v38 = vpop.f32.mrb[7].mxu1 }
 0x20a   :  { %v880_v39 = vadd.f32 %v3116_v17, %v738_v38  ;;  %2399 = vmatprep.mubr.msk.f32.mxu0 %vm949_vm5, %v910_v34 }
 0x20b   :  { %2400 = vmatmul.mubr.msk.f32.gmra.mrb[6].mxu0 %vm949_vm5, %v911_v36  ;;  %v913_v42 = vmax.f32 %v881_v37, 0.0 }
 0x20c   :  { %v912_v40 = vmax.f32 %v880_v39, 0.0  ;;  %v2351_v41 = vpop.f32.mrb[8].mxu1 }
 0x20d   :  { %v883_v43 = vadd.f32 %v2351_v41, %v3116_v17  ;;  %v748_v44 = vpop.f32.mrb[9].mxu1 }
 0x20e   :  { %v882_v45 = vadd.f32 %v3116_v17, %v748_v44  ;;  %2402 = vmatprep.mubr.msk.f32.mxu0 %vm949_vm5, %v912_v40 }
 0x20f   :  { %2403 = vmatmul.mubr.msk.f32.gmra.mrb[8].mxu0 %vm949_vm5, %v913_v42  ;;  %v915_v48 = vmax.f32 %v883_v43, 0.0 }
 0x210   :  { %v914_v46 = vmax.f32 %v882_v45, 0.0  ;;  %v2354_v47 = vpop.f32.mrb[10].mxu1 }
 0x211   :  { %v885_v49 = vadd.f32 %v2354_v47, %v3116_v17  ;;  %v758_v50 = vpop.f32.mrb[11].mxu1 }
 0x212   :  { %v884_v51 = vadd.f32 %v3116_v17, %v758_v50  ;;  %2405 = vmatprep.mubr.msk.f32.mxu0 %vm949_vm5, %v914_v46 }
 0x213   :  { %2406 = vmatmul.mubr.msk.f32.gmra.mrb[10].mxu0 %vm949_vm5, %v915_v48  ;;  %v917_v54 = vmax.f32 %v885_v49, 0.0 }
 0x214   :  { %v916_v52 = vmax.f32 %v884_v51, 0.0  ;;  %v2357_v53 = vpop.f32.mrb[12].mxu1  ;;  %v1289_v51 = vld [vmem:[%s3298_s11 + $0x10] sm:$0xff] }
 0x215   :  { %v887_v55 = vadd.f32 %v2357_v53, %v3116_v17  ;;  %v768_v56 = vpop.f32.mrb[13].mxu1 }
 0x216   :  { %v886_v57 = vadd.f32 %v3116_v17, %v768_v56  ;;  %2408 = vmatprep.mubr.msk.f32.mxu0 %vm949_vm5, %v916_v52  ;;  %v1290_v52 = vld [vmem:[%s3298_s11 + $0x18] sm:$0xff]  ;;  %v2039_v56 = vld [vmem:[%s3297_s10] ss:$0 sm:$0xff] }
 0x217   :  { %2409 = vmatmul.mubr.msk.f32.gmra.mrb[12].mxu0 %vm949_vm5, %v917_v54  ;;  %v919_v60 = vmax.f32 %v887_v55, 0.0  ;;  %v2568_v53 = vpack.c.bf16 %v1290_v52, %v1289_v51  ;;  %v1508_v54 = vld [vmem:[%s3300_s13 + $0x8] sm:$0xff] }
 0x218   :  { %v918_v58 = vmax.f32 %v886_v57, 0.0  ;;  %v2360_v59 = vpop.f32.mrb[14].mxu1  ;;  %v2609_v57 = vadd.f32 %v2039_v56, %v2039_v56 }
 0x219   :  { %v889_v61 = vadd.f32 %v2360_v59, %v3116_v17  ;;  %v778_v62 = vpop.f32.mrb[15].mxu1  ;;  %2569 = vmatprep.subr.bf16.mxu0 %v2568_v53 }
 0x21a   :  { %v888_v63 = vadd.f32 %v3116_v17, %v778_v62  ;;  %2411 = vmatprep.mubr.msk.f32.mxu0 %vm949_vm5, %v918_v58  ;;  %2571 = vmatpush3.bf16.msra.mxu0 %v2568_v53 }
 0x21b   :  { %2412 = vmatmul.mubr.msk.f32.gmra.mrb[14].mxu0 %vm949_vm5, %v919_v60  ;;  %v921_v2 = vmax.f32 %v889_v61, 0.0 }
 0x21c   :  { %v920_v0 = vmax.f32 %v888_v63, 0.0  ;;  %v2363_v1 = vpop.f32.mrb[16].mxu1 }
 0x21d   :  { %v891_v3 = vadd.f32 %v2363_v1, %v3116_v17  ;;  %v788_v4 = vpop.f32.mrb[17].mxu1 }
 0x21e   :  { %v890_v5 = vadd.f32 %v3116_v17, %v788_v4  ;;  %2414 = vmatprep.mubr.msk.f32.mxu0 %vm949_vm5, %v920_v0 }
 0x21f   :  { %2415 = vmatmul.mubr.msk.f32.gmra.mrb[16].mxu0 %vm949_vm5, %v921_v2  ;;  %v923_v8 = vmax.f32 %v891_v3, 0.0 }
 0x220   :  { %v922_v6 = vmax.f32 %v890_v5, 0.0  ;;  %v2366_v7 = vpop.f32.mrb[18].mxu1 }
 0x221   :  { %v893_v9 = vadd.f32 %v2366_v7, %v3116_v17  ;;  %v798_v10 = vpop.f32.mrb[19].mxu1 }
 0x222   :  { %v892_v11 = vadd.f32 %v3116_v17, %v798_v10  ;;  %2417 = vmatprep.mubr.msk.f32.mxu0 %vm949_vm5, %v922_v6 }
 0x223   :  { %2418 = vmatmul.mubr.msk.f32.gmra.mrb[2].mxu0 %vm949_vm5, %v923_v8  ;;  %v925_v14 = vmax.f32 %v893_v9, 0.0 }
 0x224   :  { %v924_v12 = vmax.f32 %v892_v11, 0.0  ;;  %v2369_v13 = vpop.f32.mrb[20].mxu1 }
 0x225   :  { %v895_v15 = vadd.f32 %v2369_v13, %v3116_v17  ;;  %v808_v16 = vpop.f32.mrb[21].mxu1 }
 0x226   :  { %v894_v18 = vadd.f32 %v3116_v17, %v808_v16  ;;  %2420 = vmatprep.mubr.msk.f32.mxu0 %vm949_vm5, %v924_v12 }
 0x227   :  { %2421 = vmatmul.mubr.msk.f32.gmra.mrb[4].mxu0 %vm949_vm5, %v925_v14  ;;  %v927_v21 = vmax.f32 %v895_v15, 0.0 }
 0x228   :  { %v926_v19 = vmax.f32 %v894_v18, 0.0  ;;  %v2372_v20 = vpop.f32.mrb[22].mxu1 }
 0x229   :  { %v897_v22 = vadd.f32 %v2372_v20, %v3116_v17  ;;  %v818_v23 = vpop.f32.mrb[23].mxu1 }
 0x22a   :  { %v896_v24 = vadd.f32 %v3116_v17, %v818_v23  ;;  %2423 = vmatprep.mubr.msk.f32.mxu0 %vm949_vm5, %v926_v19 }
 0x22b   :  { %2424 = vmatmul.mubr.msk.f32.gmra.mrb[6].mxu0 %vm949_vm5, %v927_v21  ;;  %v929_v27 = vmax.f32 %v897_v22, 0.0 }
 0x22c   :  { %v928_v25 = vmax.f32 %v896_v24, 0.0  ;;  %v2375_v26 = vpop.f32.mrb[24].mxu1 }
 0x22d   :  { %v899_v28 = vadd.f32 %v2375_v26, %v3116_v17  ;;  %v828_v29 = vpop.f32.mrb[25].mxu1 }
 0x22e   :  { %v898_v30 = vadd.f32 %v3116_v17, %v828_v29  ;;  %2426 = vmatprep.mubr.msk.f32.mxu0 %vm949_vm5, %v928_v25 }
 0x22f   :  { %2427 = vmatmul.mubr.msk.f32.gmra.mrb[8].mxu0 %vm949_vm5, %v929_v27  ;;  %v931_v33 = vmax.f32 %v899_v28, 0.0  ;;  %v1509_v27 = vld [vmem:[%s3300_s13 + $0x10] sm:$0xff]  ;;  %v1510_v28 = vld [vmem:[%s3300_s13 + $0x18] sm:$0xff] }
 0x230   :  { %v930_v31 = vmax.f32 %v898_v30, 0.0  ;;  %v2378_v32 = vpop.f32.mrb[26].mxu1  ;;  %v2576_v29 = vpack.c.bf16 %v1510_v28, %v1509_v27  ;;  %v2072_v30 = vld [vmem:[%s3299_s12] ss:$0 sm:$0xff] }
 0x231   :  { %v901_v34 = vadd.f32 %v2378_v32, %v3116_v17  ;;  %v838_v35 = vpop.f32.mrb[27].mxu1 }
 0x232   :  { %v900_v36 = vadd.f32 %v3116_v17, %v838_v35  ;;  %2429 = vmatprep.mubr.msk.f32.mxu0 %vm949_vm5, %v930_v31 }
 0x233   :  { %2430 = vmatmul.mubr.msk.f32.gmra.mrb[10].mxu0 %vm949_vm5, %v931_v33  ;;  %v933_v39 = vmax.f32 %v901_v34, 0.0 }
 0x234   :  { %v932_v37 = vmax.f32 %v900_v36, 0.0  ;;  %v2381_v38 = vpop.f32.mrb[28].mxu1 }
 0x235   :  { %v903_v40 = vadd.f32 %v2381_v38, %v3116_v17  ;;  %v848_v41 = vpop.f32.mrb[29].mxu1 }
 0x236   :  { %v902_v42 = vadd.f32 %v3116_v17, %v848_v41  ;;  %2432 = vmatprep.mubr.msk.f32.mxu0 %vm949_vm5, %v932_v37 }
 0x237   :  { %2433 = vmatmul.mubr.msk.f32.gmra.mrb[12].mxu0 %vm949_vm5, %v933_v39  ;;  %v935_v45 = vmax.f32 %v903_v40, 0.0 }
 0x238   :  { %v934_v43 = vmax.f32 %v902_v42, 0.0  ;;  %v2384_v44 = vpop.f32.mrb[30].mxu1 }
 0x239   :  { %v905_v46 = vadd.f32 %v2384_v44, %v3116_v17  ;;  %v858_v47 = vpop.f32.mrb[31].mxu1 }
 0x23a   :  { %v904_v48 = vadd.f32 %v3116_v17, %v858_v47  ;;  %2435 = vmatprep.mubr.msk.f32.mxu0 %vm949_vm5, %v934_v43  ;;  %v1507_v17 = vld [vmem:[%s3300_s13] sm:$0xff] }
 0x23b   :  { %2436 = vmatmul.mubr.msk.f32.gmra.mrb[14].mxu0 %vm949_vm5, %v935_v45  ;;  %v937_v50 = vmax.f32 %v905_v46, 0.0  ;;  %v2572_v55 = vpack.c.bf16 %v1508_v54, %v1507_v17 }
 0x23c   :  { %v936_v49 = vmax.f32 %v904_v48, 0.0 }
 0x23d   :  { %2573 = vmatprep.subr.bf16.mxu0 %v2572_v55 }
 0x23e   :  { %2438 = vmatprep.mubr.msk.f32.mxu0 %vm949_vm5, %v936_v49 }
 0x23f   :  { %2439 = vmatmul.mubr.msk.f32.gmra.mrb[16].mxu0 %vm949_vm5, %v937_v50 }
 0x2f6   :  { %v2419_v58 = vpop.f32.mrb[2].mxu0 }
 0x2f7   :  { %v1192_v59 = vpop.f32.mrb[3].mxu0  ;;  %v2608_v61 = vadd.f32 %v2609_v57, %v2419_v58 }
 0x2f8   :  { %v2610_v60 = vadd.f32 %v2609_v57, %v1192_v59 }
 0x2fa   :  { %v2422_v62 = vpop.f32.mrb[4].mxu0  ;;  %2449 = vmatprep.mubr.msk.f32.mxu0 %vm949_vm5, %v2610_v60 }
 0x2fb   :  { %v1202_v63 = vpop.f32.mrb[5].mxu0  ;;  %2450 = vmatmul.mubr.msk.f32.vlgmr.msra.gmra.mrb[18].mxu0 %vm949_vm5, %v2608_v61  ;;  %v2612_v1 = vadd.f32 %v2609_v57, %v2422_v62 }
 0x2fc   :  { %v2614_v0 = vadd.f32 %v2609_v57, %v1202_v63  ;;  %2575 = vmatpush3.bf16.msra.mxu0 %v2572_v55 }
 0x2fd   :  { %2577 = vmatprep.subr.bf16.mxu0 %v2576_v29 }
 0x2fe   :  { %v2425_v2 = vpop.f32.mrb[6].mxu0  ;;  %2452 = vmatprep.mubr.msk.f32.mxu0 %vm949_vm5, %v2614_v0 }
 0x2ff   :  { %v1212_v3 = vpop.f32.mrb[7].mxu0  ;;  %2453 = vmatmul.mubr.msk.f32.gmra.mrb[20].mxu0 %vm949_vm5, %v2612_v1  ;;  %v2616_v5 = vadd.f32 %v2609_v57, %v2425_v2 }
 0x300   :  { %v2618_v4 = vadd.f32 %v2609_v57, %v1212_v3  ;;  %2579 = vmatpush3.bf16.msra.mxu0 %v2576_v29 }
 0x302   :  { %v2428_v6 = vpop.f32.mrb[8].mxu0  ;;  %2455 = vmatprep.mubr.msk.f32.mxu0 %vm949_vm5, %v2618_v4 }
 0x303   :  { %v1222_v7 = vpop.f32.mrb[9].mxu0  ;;  %2456 = vmatmul.mubr.msk.f32.gmra.mrb[22].mxu0 %vm949_vm5, %v2616_v5  ;;  %v2620_v9 = vadd.f32 %v2609_v57, %v2428_v6 }
 0x304   :  { %v2622_v8 = vadd.f32 %v2609_v57, %v1222_v7 }
 0x306   :  { %v2431_v10 = vpop.f32.mrb[10].mxu0  ;;  %2458 = vmatprep.mubr.msk.f32.mxu0 %vm949_vm5, %v2622_v8 }
 0x307   :  { %v1232_v11 = vpop.f32.mrb[11].mxu0  ;;  %2459 = vmatmul.mubr.msk.f32.gmra.mrb[24].mxu0 %vm949_vm5, %v2620_v9  ;;  %v2624_v13 = vadd.f32 %v2609_v57, %v2431_v10 }
 0x308   :  { %v2626_v12 = vadd.f32 %v2609_v57, %v1232_v11 }
 0x30a   :  { %v2434_v14 = vpop.f32.mrb[12].mxu0  ;;  %2461 = vmatprep.mubr.msk.f32.mxu0 %vm949_vm5, %v2626_v12 }
 0x30b   :  { %v1242_v15 = vpop.f32.mrb[13].mxu0  ;;  %2462 = vmatmul.mubr.msk.f32.gmra.mrb[26].mxu0 %vm949_vm5, %v2624_v13  ;;  %v2628_v18 = vadd.f32 %v2609_v57, %v2434_v14  ;;  %v2719_v14 = vmov 0.0|0.0  }
 0x30c   :  { %v2630_v16 = vadd.f32 %v2609_v57, %v1242_v15  ;;  %2580 = vmatprep.subr.bf16.mxu1 %v2719_v14  ;;  %v2721_v15 = vmov 0.0  }
 0x30d   :  { %2537 = vmatprep.mubr.msk.f32.mxu1 %vm2720_vm6, %v2721_v15  ;;  %2547 = vmatprep.subr.mxu0 %v2721_v15 }
 0x30e   :  { %v2437_v19 = vpop.f32.mrb[14].mxu0  ;;  %2464 = vmatprep.mubr.msk.f32.mxu0 %vm949_vm5, %v2630_v16  ;;  %v2089_v16 = vld [vmem:[%s3301_s14] ss:$0 sm:$0xff] }
 0x30f   :  { %v1252_v20 = vpop.f32.mrb[15].mxu0  ;;  %2465 = vmatmul.mubr.msk.f32.gmra.mrb[28].mxu0 %vm949_vm5, %v2628_v18  ;;  %v2632_v22 = vadd.f32 %v2609_v57, %v2437_v19 }
 0x310   :  { %v2634_v21 = vadd.f32 %v2609_v57, %v1252_v20 }
 0x312   :  { %v2440_v23 = vpop.f32.mrb[16].mxu0  ;;  %2467 = vmatprep.mubr.msk.f32.mxu0 %vm949_vm5, %v2634_v21 }
 0x313   :  { %v1262_v24 = vpop.f32.mrb[17].mxu0  ;;  %2468 = vmatmul.mubr.msk.f32.gmra.mrb[30].mxu0 %vm949_vm5, %v2632_v22  ;;  %v2636_v26 = vadd.f32 %v2609_v57, %v2440_v23 }
 0x314   :  { %v2638_v25 = vadd.f32 %v2609_v57, %v1262_v24 }
 0x316   :  { %2470 = vmatprep.mubr.msk.f32.mxu0 %vm949_vm5, %v2638_v25 }
 0x317   :  { %2471 = vmatmul.mubr.msk.f32.gmra.mrb[32].mxu0 %vm949_vm5, %v2636_v26 }
 0x3ce   :  { %v2451_v31 = vpop.f32.mrb[18].mxu0 }
 0x3cf   :  { %v1418_v32 = vadd.f32 %v2451_v31, %v2072_v30  ;;  %v1412_v33 = vpop.f32.mrb[19].mxu0 }
 0x3d0   :  { %v1413_v34 = vadd.f32 %v2072_v30, %v1412_v33 }
 0x3d1   :  { %v1492_v37 = vmax.f32 %v1418_v32, 0.0 }
 0x3d2   :  { %v1491_v35 = vmax.f32 %v1413_v34, 0.0  ;;  %v2454_v36 = vpop.f32.mrb[20].mxu0 }
 0x3d3   :  { %v1428_v38 = vadd.f32 %v2454_v36, %v2072_v30  ;;  %v1422_v39 = vpop.f32.mrb[21].mxu0 }
 0x3d4   :  { %v1423_v40 = vadd.f32 %v2072_v30, %v1422_v39  ;;  %2481 = vmatprep.mubr.msk.f32.mxu0 %vm949_vm5, %v1491_v35 }
 0x3d5   :  { %2482 = vmatmul.mubr.msk.f32.vlgmr.msra.gmra.mrb[34].mxu0 %vm949_vm5, %v1492_v37  ;;  %v1494_v43 = vmax.f32 %v1428_v38, 0.0 }
 0x3d6   :  { %v1493_v41 = vmax.f32 %v1423_v40, 0.0  ;;  %v2457_v42 = vpop.f32.mrb[22].mxu0 }
 0x3d7   :  { %v1438_v44 = vadd.f32 %v2457_v42, %v2072_v30  ;;  %v1432_v45 = vpop.f32.mrb[23].mxu0 }
 0x3d8   :  { %v1433_v46 = vadd.f32 %v2072_v30, %v1432_v45  ;;  %2484 = vmatprep.mubr.msk.f32.mxu0 %vm949_vm5, %v1493_v41 }
 0x3d9   :  { %2485 = vmatmul.mubr.msk.f32.gmra.mrb[36].mxu0 %vm949_vm5, %v1494_v43  ;;  %v1496_v49 = vmax.f32 %v1438_v44, 0.0 }
 0x3da   :  { %v1495_v47 = vmax.f32 %v1433_v46, 0.0  ;;  %v2460_v48 = vpop.f32.mrb[24].mxu0 }
 0x3db   :  { %v1448_v50 = vadd.f32 %v2460_v48, %v2072_v30  ;;  %v1442_v51 = vpop.f32.mrb[25].mxu0 }
 0x3dc   :  { %v1443_v52 = vadd.f32 %v2072_v30, %v1442_v51  ;;  %2487 = vmatprep.mubr.msk.f32.mxu0 %vm949_vm5, %v1495_v47 }
 0x3dd   :  { %2488 = vmatmul.mubr.msk.f32.gmra.mrb[38].mxu0 %vm949_vm5, %v1496_v49  ;;  %v1498_v54 = vmax.f32 %v1448_v50, 0.0 }
 0x3de   :  { %v1497_v53 = vmax.f32 %v1443_v52, 0.0  ;;  %v2463_v17 = vpop.f32.mrb[26].mxu0 }
 0x3df   :  { %v1458_v55 = vadd.f32 %v2463_v17, %v2072_v30  ;;  %v1452_v56 = vpop.f32.mrb[27].mxu0 }
 0x3e0   :  { %v1453_v57 = vadd.f32 %v2072_v30, %v1452_v56  ;;  %2490 = vmatprep.mubr.msk.f32.mxu0 %vm949_vm5, %v1497_v53  ;;  %v1782_v56 = vld [vmem:[%s3302_s15] sm:$0xff] }
 0x3e1   :  { %2491 = vmatmul.mubr.msk.f32.gmra.mrb[40].mxu0 %vm949_vm5, %v1498_v54  ;;  %v1500_v60 = vmax.f32 %v1458_v55, 0.0 }
 0x3e2   :  { %v1499_v58 = vmax.f32 %v1453_v57, 0.0  ;;  %v2466_v59 = vpop.f32.mrb[28].mxu0  ;;  %v1783_v57 = vld [vmem:[%s3302_s15 + $0x8] sm:$0xff] }
 0x3e3   :  { %v1468_v61 = vadd.f32 %v2466_v59, %v2072_v30  ;;  %v1462_v62 = vpop.f32.mrb[29].mxu0  ;;  %v1711_v59 = vld [vmem:[%s3292_s5] sm:$0xff] }
 0x3e4   :  { %v1463_v63 = vadd.f32 %v2072_v30, %v1462_v62  ;;  %2493 = vmatprep.mubr.msk.f32.mxu0 %vm949_vm5, %v1499_v58 }
 0x3e5   :  { %2494 = vmatmul.mubr.msk.f32.gmra.mrb[42].mxu0 %vm949_vm5, %v1500_v60  ;;  %v1502_v2 = vmax.f32 %v1468_v61, 0.0  ;;  %v2605_v60 = vpack.c.bf16 %v1783_v57, %v1782_v56 }
 0x3e6   :  { %v1501_v0 = vmax.f32 %v1463_v63, 0.0  ;;  %v2469_v1 = vpop.f32.mrb[30].mxu0  ;;  %v1866_v63 = vld [vmem:[#allocation2] sm:$0x1] }
 0x3e7   :  { %v1478_v3 = vadd.f32 %v2469_v1, %v2072_v30  ;;  %v1472_v4 = vpop.f32.mrb[31].mxu0  ;;  %v2106_v1 = vld [vmem:[%s3303_s16] ss:$0 sm:$0xff]  ;;  %s2723_s16 = smov [#allocation3]  }
 0x3e8   :  { %v1473_v5 = vadd.f32 %v2072_v30, %v1472_v4  ;;  %2496 = vmatprep.mubr.msk.f32.mxu0 %vm949_vm5, %v1501_v0  ;;  %v2722_v0 = vmov 0   ;;  %s1962_s8 = sshll.u32 %s2723_s16, 4  ;;  %s1963_s8 = int_to_ptr.vmem [resolvable:$true] %s1962_s8 }
 0x3e9   :  { %2497 = vmatmul.mubr.msk.f32.gmra.mrb[44].mxu0 %vm949_vm5, %v1502_v2  ;;  %v1504_v8 = vmax.f32 %v1478_v3, 0.0  ;;  %2692 = vset.pattern.permute.xlu0 %v2722_v0  ;;  %s2695_s9 = scalar_lea.vmem %s1963_s8, 16  ;;  %p2700_p1 = scmp.lt.s32.totalorder %s1963_s8, %s1963_s8 }
 0x3ea   :  { %v1503_v6 = vmax.f32 %v1473_v5, 0.0  ;;  %v2472_v7 = vpop.f32.mrb[32].mxu0  ;;  %1869 = vperm.xlu0 %2692, %v1866_v63   ;;  %p2696_p0 = scmp.ne.s32.totalorder %s1963_s8, %s2695_s9 }
 0x3eb   :  { %v1488_v9 = vadd.f32 %v2472_v7, %v2072_v30  ;;  %v1482_v10 = vpop.f32.mrb[33].mxu0  ;;  %v1872_v7 = vlaneseq }
 0x3ec   :  { %v1483_v11 = vadd.f32 %v2072_v30, %v1482_v10  ;;  %2499 = vmatprep.mubr.msk.f32.mxu0 %vm949_vm5, %v1503_v6  ;;  %v1865_v6 = vld [vmem:[%s3304_s17] sm:$0x1]  ;;  %s2699_s17 = scalar_lea.vmem %s1963_s8, 32 }
 0x3ed   :  { %2500 = vmatmul.mubr.msk.f32.gmra.mrb[46].mxu0 %vm949_vm5, %v1504_v8  ;;  %v1506_v13 = vmax.f32 %v1488_v9, 0.0  ;;  %v1873_v8 = vshrl.u32 %v1872_v7, 7  ;;  %p2701_p2 = scmp.lt.s32.totalorder %s2699_s17, %s2695_s9 }
 0x3ee   :  { %v1505_v12 = vmax.f32 %v1483_v11, 0.0 }
 0x3ef   :  { %v1874_v9 = vsub.s32 0, %v1873_v8  ;;  %p2702_p3 = por %p2701_p2, %p2700_p1 }
 0x3f0   :  { %2502 = vmatprep.mubr.msk.f32.mxu0 %vm949_vm5, %v1505_v12 }
 0x3f1   :  { %2503 = vmatmul.mubr.msk.f32.gmra.mrb[48].mxu0 %vm949_vm5, %v1506_v13  ;;  %p2703_p4 = pnand %p2702_p3, %p2696_p0 }
 0x3f2   :  { %2549 = vmatprep.mubr.msk.f32.mxu0 %vm2720_vm6, %v2721_v15 }
 0x469   :  { %v1870_v10 = vpop.permute.xlu0 %1869 }
 0x46a   :  { %v1875_v11 = vrot.slane %v1870_v10, %v1874_v9 }
 0x4a8   :  { %v2483_v18 = vpop.f32.mrb[34].mxu0 }
 0x4a9   :  { %v1638_v19 = vadd.f32 %v2483_v18, %v2089_v16  ;;  %v1632_v20 = vpop.f32.mrb[35].mxu0 }
 0x4aa   :  { %v1633_v21 = vadd.f32 %v2089_v16, %v1632_v20 }
 0x4ac   :  { %v2581_v22 = vpack.c.bf16 %v1638_v19, %v1633_v21  ;;  %v2486_v23 = vpop.f32.mrb[36].mxu0 }
 0x4ad   :  { %v1648_v24 = vadd.f32 %v2486_v23, %v2089_v16  ;;  %v1642_v25 = vpop.f32.mrb[37].mxu0 }
 0x4ae   :  { %v1643_v26 = vadd.f32 %v2089_v16, %v1642_v25  ;;  %2582 = vmatpush3.bf16.msra.mxu1 %v2581_v22 }
 0x4af   :  { %2583 = vmatprep.subr.bf16.mxu1 %v2719_v14 }
 0x4b0   :  { %v2584_v27 = vpack.c.bf16 %v1648_v24, %v1643_v26  ;;  %v2489_v28 = vpop.f32.mrb[38].mxu0 }
 0x4b1   :  { %v1658_v29 = vadd.f32 %v2489_v28, %v2089_v16  ;;  %v1652_v30 = vpop.f32.mrb[39].mxu0 }
 0x4b2   :  { %v1653_v31 = vadd.f32 %v2089_v16, %v1652_v30  ;;  %2585 = vmatpush3.bf16.msra.mxu1 %v2584_v27 }
 0x4b3   :  { %2586 = vmatprep.subr.bf16.mxu1 %v2719_v14 }
 0x4b4   :  { %v2587_v32 = vpack.c.bf16 %v1658_v29, %v1653_v31  ;;  %v2492_v33 = vpop.f32.mrb[40].mxu0 }
 0x4b5   :  { %v1668_v34 = vadd.f32 %v2492_v33, %v2089_v16  ;;  %v1662_v35 = vpop.f32.mrb[41].mxu0 }
 0x4b6   :  { %v1663_v36 = vadd.f32 %v2089_v16, %v1662_v35  ;;  %2588 = vmatpush3.bf16.msra.mxu1 %v2587_v32 }
 0x4b7   :  { %2589 = vmatprep.subr.bf16.mxu1 %v2719_v14 }
 0x4b8   :  { %v2590_v37 = vpack.c.bf16 %v1668_v34, %v1663_v36  ;;  %v2495_v38 = vpop.f32.mrb[42].mxu0 }
 0x4b9   :  { %v1678_v39 = vadd.f32 %v2495_v38, %v2089_v16  ;;  %v1672_v40 = vpop.f32.mrb[43].mxu0 }
 0x4ba   :  { %v1673_v41 = vadd.f32 %v2089_v16, %v1672_v40  ;;  %2591 = vmatpush3.bf16.msra.mxu1 %v2590_v37 }
 0x4bb   :  { %2592 = vmatprep.subr.bf16.mxu1 %v2719_v14 }
 0x4bc   :  { %v2593_v42 = vpack.c.bf16 %v1678_v39, %v1673_v41  ;;  %v2498_v43 = vpop.f32.mrb[44].mxu0 }
 0x4bd   :  { %v1688_v44 = vadd.f32 %v2498_v43, %v2089_v16  ;;  %v1682_v45 = vpop.f32.mrb[45].mxu0 }
 0x4be   :  { %v1683_v46 = vadd.f32 %v2089_v16, %v1682_v45  ;;  %2594 = vmatpush3.bf16.msra.mxu1 %v2593_v42 }
 0x4bf   :  { %2595 = vmatprep.subr.bf16.mxu1 %v2719_v14 }
 0x4c0   :  { %v2596_v47 = vpack.c.bf16 %v1688_v44, %v1683_v46  ;;  %v2501_v48 = vpop.f32.mrb[46].mxu0 }
 0x4c1   :  { %v1698_v49 = vadd.f32 %v2501_v48, %v2089_v16  ;;  %v1692_v50 = vpop.f32.mrb[47].mxu0 }
 0x4c2   :  { %v1693_v51 = vadd.f32 %v2089_v16, %v1692_v50  ;;  %2597 = vmatpush3.bf16.msra.mxu1 %v2596_v47 }
 0x4c3   :  { %2598 = vmatprep.subr.bf16.mxu1 %v2719_v14 }
 0x4c4   :  { %v2599_v52 = vpack.c.bf16 %v1698_v49, %v1693_v51  ;;  %v2504_v53 = vpop.f32.mrb[48].mxu0 }
 0x4c5   :  { %v1708_v17 = vadd.f32 %v2504_v53, %v2089_v16  ;;  %v1702_v54 = vpop.f32.mrb[49].mxu0 }
 0x4c6   :  { %v1703_v55 = vadd.f32 %v2089_v16, %v1702_v54  ;;  %2600 = vmatpush3.bf16.msra.mxu1 %v2599_v52 }
 0x4c7   :  { %2601 = vmatprep.subr.bf16.mxu1 %v2719_v14 }
 0x4c8   :  { %v2602_v58 = vpack.c.bf16 %v1708_v17, %v1703_v55 }
 0x4ca   :  { %2603 = vmatpush3.bf16.msra.mxu1 %v2602_v58 }
 0x4cb   :  { %2604 = vmatprep.subr.bf16.mxu1 %v2719_v14 }
 0x4cd   :  { %2538 = vmatmul.mubr.f32.vlgmr.msra.gmra.mrb[32].mxu1 %v1711_v59 }
 0x4ce   :  { %2606 = vmatpush3.bf16.msra.mxu1 %v2605_v60  ;;  %2544 = vmatprep.mubr.msk.f32.mxu1 %vm2720_vm6, %v2721_v15 }
 0x5a0   :  { %v1778_v61 = vpop.f32.mrb[32].mxu1 }
 0x5a1   :  { %v2539_v62 = vpop.f32.mrb[33].mxu1  ;;  %2545 = vmatmul.mubr.msk.f32.vlgmr.msra.gmra.mrb[34].mxu1 %vm219_vm2, %v1778_v61 }
 0x674   :  { %v1860_v2 = vpop.f32.mrb[34].mxu1 }
 0x675   :  { %v1861_v3 = vadd.f32 %v2106_v1, %v1860_v2  ;;  %v2546_v4 = vpop.f32.mrb[35].mxu1 }
 0x677   :  { %v1864_v5 = vmax.f32 %v1861_v3, 0.0 }
 0x679   :  { %2548 = vmatpush3.xpose.msk.msra.mxu0 %vm949_vm5, %v1864_v5 }
 0x67c   :  { %2550 = vmatmul.mubr.msk.f32.vlgmr.msra.gmra.mrb[50].mxu0 %vm949_vm5, %v1865_v6 }
 0x74f   :  { %v1948_v12 = vpop.f32.mrb[50].mxu0 }
 0x750   :  { %v1949_v13 = vadd.f32 %v1948_v12, %v1875_v11  ;;  %v2551_v14 = vpop.f32.mrb[51].mxu0 }
 0x752   :  { %v1952_v15 = vmul.f32 1.442695, %v1949_v13 }
 0x754   :  { %2693 = vpow2.f32 %v1952_v15 }
 0x75e   :  { %v2694_v16 = vpop.eup %2693 }
 0x75f   :  { %1955 = vst.msk [vmem:[#allocation3] sm:$0x1] %vm1954_vm7, %v2694_v16 }
 0x760   :  { %2706 = shalt.err (!%p2703_p4)
}
 0x761   :  { %s2707_s7 = scalar_lea.hbm %s3306_s19, 16 }
 0x762   :  { %p2708_p5 = scmp.ne.s32.totalorder %s3306_s19, %s2707_s7  ;;  %p2711_p6 = scmp.lt.u32.totalorder %s2707_s7, %s3306_s19 }
 0x764   :  { %p2713_p7 = pnand %p2711_p6, %p2708_p5 }
 0x766   :  { %2716 = shalt.err (!%p2713_p7)
}
 0x767   :  { %1965 = dma.vmem_to_hbm [thread:$0]  %s1963_s8, 16, %s3306_s19, [#allocation4]  }
 0x768   :  { %2717 = dma.done.wait [#allocation4], 16  }
 0x769   :  { %2718 = vsyncadd [#allocation4], 4294967280 }
 0x76a   :  { %1969 = vsyncpa [#allocation4], 1 }

</bundles_post_ra>
